<compile_context>
chip_gen: v7x
topology: tpu7x:2x2x1
jax: 0.10.0
libtpu: 0.0.40
codegen_flags: <defaults>
</compile_context>

<pallas_src>
import jax
import jax.numpy as jnp
from jax import lax
from jax.experimental import pallas as pl
from jax.experimental.pallas import tpu as pltpu


_SMEM = pl.BlockSpec(memory_space=pltpu.MemorySpace.SMEM)
_LANE = 128


# ----------------------------------------------------------------------------- #
# Hardware-aware tiling helpers
# ----------------------------------------------------------------------------- #
def _round_up(n, m):
    return ((n + m - 1) // m) * m


def _vmem_capacity_bytes():
    try:
        cap = int(getattr(pltpu.get_tpu_info(), "vmem_capacity_bytes"))
        if cap > 0:
            return cap
    except Exception:
        pass
    return 64 * 1024 * 1024          # conservative default (v7x per-core VMEM)


def _vmem_limit(vmem_cap):
    # 48 MiB on v7x (64 MiB physical), 96 MiB on v5e/v6e (128 MiB physical).
    return min(vmem_cap * 3 // 4, 100 * 1024 * 1024)


def _pick_tile(n, max_tile):
    """Largest multiple of 128 dividing n (n % 128 == 0) that is <= max(128, max_tile)."""
    t = min(n, max(128, (max_tile // 128) * 128))
    while t > 128 and n % t:
        t -= 128
    return t


def _pick_build_tile(npad, mp, d, vmem_cap):
    """Row tile for the Kff/Kfs build kernel, bounded by a VMEM footprint budget."""
    cap = 1024 if vmem_cap >= (100 << 20) else (512 if vmem_cap >= (80 << 20) else 256)
    budget = int(vmem_cap * 0.45)
    best, t = 128, 128
    while t <= min(npad, cap):
        if npad % t == 0:
            foot = 4 * (2 * t * (npad + mp)       # double-buffered Kff/Kfs output blocks
                        + 2 * t * d               # double-buffered X row block
                        + d * (npad + mp)         # Xt / Xnewt (resident)
                        + (npad + mp))            # x2 / s2
            if foot <= budget:
                best = t
        t += 128
    return best


def _pick_predict_tiles(npad, mp, d, vmem_cap):
    budget = int(vmem_cap * 0.4)
    tk = _pick_tile(npad, 512)
    tj = _pick_tile(mp, 256)

    def foot(tk_, tj_):
        return 4 * (2 * tk_ * mp + 2 * tk_ * tj_ + 2 * tk_        # A blocks + v
                    + 2 * mp * tj_ + 2 * tj_                      # cov / loc output blocks
                    + mp * d + 2 * d * tj_ + mp + 2 * tj_)        # Xnew, Xnew^T, s2

    while tk > 128 and foot(tk, tj) > budget:
        tk = _pick_tile(npad, tk - 128)
    while tj > 128 and foot(tk, tj) > budget:
        tj = _pick_tile(mp, tj - 128)
    return tk, tj


# ----------------------------------------------------------------------------- #
# Pallas kernels
# ----------------------------------------------------------------------------- #
def _build_kernel_mats(params_ref, nvalid_ref, xb_ref, xt_ref, xnewt_ref,
                       x2_ref, s2_ref, kff_ref, kfs_ref):
    """Row-tiled fused construction of Kff (+ noise*I) and Kfs.

    params (SMEM f32[4]) = [variance, -0.5/lengthscale^2, noise, kss_noise]
    nvalid (SMEM i32[1]) = number of real (unpadded) training rows
    xb_ref:    (tr, D)   row block i of padded X (pipelined DMA)
    xt_ref:    (D, Npad) padded X transposed (native MXU RHS, DMA'd once)
    xnewt_ref: (D, Mp)   padded Xnew transposed
    x2_ref:    (1, Npad) hoisted row norms of X (pad cols carry a 1e30 sentinel)
    s2_ref:    (1, Mp)   hoisted row norms of Xnew
    kff_ref:   (tr, Npad) row block i of Kff (+noise on diag; pad rows zeroed)
    kfs_ref:   (tr, Mp)   row block i of Kfs (pad rows zeroed)
    """
    variance = params_ref[0]
    inv_2l2 = params_ref[1]          # -0.5 / lengthscale^2 (mul, not div)
    noise = params_ref[2]
    n_valid = nvalid_ref[0]

    i = pl.program_id(0)
    tr = kff_ref.shape[0]
    start = i * tr

    xb = xb_ref[...]                                           # (tr, D)
    a2 = jnp.sum(xb * xb, axis=1, keepdims=True)               # (tr, 1) block-local
    x2 = x2_ref[...]                                           # (1, Npad)
    s2 = s2_ref[...]                                           # (1, Mp)

    row_g = start + lax.broadcasted_iota(jnp.int32, (tr, 1), 0)        # (tr, 1)
    valid = row_g < n_valid                                            # (tr, 1)
    diag_val = jnp.where(valid, noise, noise + jnp.float32(1.0))       # pad diag = noise+1

    # Kff row block: squared distances via MXU matmul + VPU epilogue + EUP exp.
    ab = lax.dot_general(xb, xt_ref[...], (((1,), (0,)), ((), ())),
                         preferred_element_type=jnp.float32)           # (tr, Npad)
    sq_ff = jnp.maximum(a2 + x2 - 2.0 * ab, 0.0)
    kff = jnp.where(valid, variance * jnp.exp(inv_2l2 * sq_ff), jnp.float32(0.0))
    col_g = lax.broadcasted_iota(jnp.int32, kff.shape, 1)
    kff_ref[...] = kff + jnp.where(col_g == row_g, diag_val, jnp.float32(0.0))

    # Kfs row block (reuses a2).
    asb = lax.dot_general(xb, xnewt_ref[...], (((1,), (0,)), ((), ())),
                          preferred_element_type=jnp.float32)          # (tr, Mp)
    sq_fs = jnp.maximum(a2 + s2 - 2.0 * asb, 0.0)
    kfs_ref[...] = jnp.where(valid, variance * jnp.exp(inv_2l2 * sq_fs),
                             jnp.float32(0.0))


def _predict_diag_kernel(params_ref, a_ref, v_ref, loc_ref, cov_ref):
    """loc = A^T v ; cov_diag = variance [+ noise] - sum(A^2, axis=0).

    Gridded over the N (reduction) axis; loc/cov accumulate in the resident
    output blocks (constant index map across the 'arbitrary' grid axis).
    """
    k = pl.program_id(0)

    @pl.when(k == 0)
    def _():
        loc_ref[...] = jnp.zeros_like(loc_ref)
        cov_ref[...] = jnp.zeros_like(cov_ref)

    a = a_ref[...]                                   # (tk, Mp) block of Lff^{-1} Kfs
    v = v_ref[...]                                   # (1, tk)  block of (Lff^{-1} y)^T
    loc_ref[...] += lax.dot_general(v, a, (((1,), (0,)), ((), ())),
                                    preferred_element_type=jnp.float32)
    cov_ref[...] += jnp.sum(a * a, axis=0, keepdims=True)

    @pl.when(k == pl.num_programs(0) - 1)
    def _():
        cov_ref[...] = (params_ref[0] + params_ref[3]) - cov_ref[...]


def _predict_full_kernel(params_ref, af_ref, ac_ref, v_ref, xnew_ref, xnewt_ref,
                         s2c_ref, s2r_ref, loc_ref, cov_ref):
    """loc = A^T v ; cov = Kss [+ noise*I] - A^T A.

    grid = (Mp/tj "parallel", Npad/tk "arbitrary").  Qss/loc accumulate across k;
    the Kss column slab is built in-kernel at the last k step (no HBM round trip).
    """
    j = pl.program_id(0)
    k = pl.program_id(1)

    @pl.when(k == 0)
    def _():
        loc_ref[...] = jnp.zeros_like(loc_ref)
        cov_ref[...] = jnp.zeros_like(cov_ref)

    af = af_ref[...]                                 # (tk, Mp)  A row block, full width
    ac = ac_ref[...]                                 # (tk, tj)  A row x column block
    v = v_ref[...]                                   # (1, tk)

    loc_ref[...] += lax.dot_general(v, ac, (((1,), (0,)), ((), ())),
                                    preferred_element_type=jnp.float32)
    # Qss column slab: contract over the row (N) axis on the MXU.
    cov_ref[...] += lax.dot_general(af, ac, (((0,), (0,)), ((), ())),
                                    preferred_element_type=jnp.float32)

    @pl.when(k == pl.num_programs(1) - 1)
    def _():
        variance = params_ref[0]
        inv_2l2 = params_ref[1]
        kss_noise = params_ref[3]
        xnew = xnew_ref[...]                         # (Mp, D)
        xnt = xnewt_ref[...]                         # (D, tj)
        s2c = s2c_ref[...]                           # (Mp, 1) hoisted norms
        s2r = s2r_ref[...]                           # (1, tj)
        ss = lax.dot_general(xnew, xnt, (((1,), (0,)), ((), ())),
                             preferred_element_type=jnp.float32)       # (Mp, tj)
        sq = jnp.maximum(s2c + s2r - 2.0 * ss, 0.0)
        kss = variance * jnp.exp(inv_2l2 * sq)
        mp, tj = kss.shape
        row_g = lax.broadcasted_iota(jnp.int32, (mp, tj), 0)
        col_g = j * tj + lax.broadcasted_iota(jnp.int32, (mp, tj), 1)
        kss = kss + jnp.where(row_g == col_g, kss_noise, jnp.float32(0.0))
        cov_ref[...] = kss - cov_ref[...]


# ----------------------------------------------------------------------------- #
# Pallas wrappers
# ----------------------------------------------------------------------------- #
def build_kernel_matrices(params, n_valid, X_pad, Xt, Xnewt, x2, s2, vmem_cap):
    Npad, D = X_pad.shape
    Mp = Xnewt.shape[1]
    tr = _pick_build_tile(Npad, Mp, D, vmem_cap)
    grid = (Npad // tr,)
    return pl.pallas_call(
        _build_kernel_mats,
        out_shape=(jax.ShapeDtypeStruct((Npad, Npad), jnp.float32),
                   jax.ShapeDtypeStruct((Npad, Mp), jnp.float32)),
        grid=grid,
        in_specs=[_SMEM, _SMEM,
                  pl.BlockSpec((tr, D), lambda i: (i, 0)),       # X row block
                  pl.BlockSpec((D, Npad), lambda i: (0, 0)),     # X^T  (resident)
                  pl.BlockSpec((D, Mp), lambda i: (0, 0)),       # Xnew^T (resident)
                  pl.BlockSpec((1, Npad), lambda i: (0, 0)),     # x2
                  pl.BlockSpec((1, Mp), lambda i: (0, 0))],      # s2
        out_specs=(pl.BlockSpec((tr, Npad), lambda i: (i, 0)),
                   pl.BlockSpec((tr, Mp), lambda i: (i, 0))),
        compiler_params=pltpu.CompilerParams(
            dimension_semantics=("parallel",),
            vmem_limit_bytes=_vmem_limit(vmem_cap)),
        cost_estimate=pl.CostEstimate(
            flops=2 * Npad * (Npad + Mp) * D + 8 * Npad * (Npad + Mp),
            transcendentals=Npad * (Npad + Mp),
            bytes_accessed=4 * (2 * Npad * D + Mp * D + Npad * Npad
                                + Npad * Mp + Npad + Mp)),
    )(params, n_valid, X_pad, Xt, Xnewt, x2, s2)


def predict_diag_pallas(params, A, v_row, vmem_cap):
    Npad, Mp = A.shape
    budget = int(vmem_cap * 0.4)
    tk = _pick_tile(Npad, 512)
    while tk > 128 and 4 * (2 * tk * Mp + 2 * tk + 4 * Mp) > budget:
        tk = _pick_tile(Npad, tk - 128)
    grid = (Npad // tk,)
    return pl.pallas_call(
        _predict_diag_kernel,
        out_shape=(jax.ShapeDtypeStruct((1, Mp), jnp.float32),
                   jax.ShapeDtypeStruct((1, Mp), jnp.float32)),
        grid=grid,
        in_specs=[_SMEM,
                  pl.BlockSpec((tk, Mp), lambda k: (k, 0)),
                  pl.BlockSpec((1, tk), lambda k: (0, k))],
        out_specs=(pl.BlockSpec((1, Mp), lambda k: (0, 0)),
                   pl.BlockSpec((1, Mp), lambda k: (0, 0))),
        compiler_params=pltpu.CompilerParams(
            dimension_semantics=("arbitrary",),
            vmem_limit_bytes=_vmem_limit(vmem_cap)),
    )(params, A, v_row)


def predict_full_pallas(params, A, v_row, Xnew_pad, Xnewt, s2_row, vmem_cap):
    Npad, Mp = A.shape
    D = Xnew_pad.shape[1]
    tk, tj = _pick_predict_tiles(Npad, Mp, D, vmem_cap)
    s2_col = s2_row.reshape(Mp, 1)
    grid = (Mp // tj, Npad // tk)
    return pl.pallas_call(
        _predict_full_kernel,
        out_shape=(jax.ShapeDtypeStruct((1, Mp), jnp.float32),
                   jax.ShapeDtypeStruct((Mp, Mp), jnp.float32)),
        grid=grid,
        in_specs=[_SMEM,
                  pl.BlockSpec((tk, Mp), lambda j, k: (k, 0)),   # A (full test width)
                  pl.BlockSpec((tk, tj), lambda j, k: (k, j)),   # A (column block)
                  pl.BlockSpec((1, tk), lambda j, k: (0, k)),    # v
                  pl.BlockSpec((Mp, D), lambda j, k: (0, 0)),    # Xnew rows (resident)
                  pl.BlockSpec((D, tj), lambda j, k: (0, j)),    # Xnew^T column block
                  pl.BlockSpec((Mp, 1), lambda j, k: (0, 0)),    # s2 (column vector)
                  pl.BlockSpec((1, tj), lambda j, k: (0, j))],   # s2 (row block)
        out_specs=(pl.BlockSpec((1, tj), lambda j, k: (0, j)),
                   pl.BlockSpec((Mp, tj), lambda j, k: (0, j))),
        compiler_params=pltpu.CompilerParams(
            dimension_semantics=("parallel", "arbitrary"),
            vmem_limit_bytes=_vmem_limit(vmem_cap)),
        cost_estimate=pl.CostEstimate(
            flops=2 * Npad * Mp * Mp + 2 * Mp * Mp * D + 2 * Npad * Mp,
            transcendentals=Mp * Mp,
            bytes_accessed=4 * (Npad * Mp * (Mp // tj + 1) + 2 * Mp * Mp + 2 * Mp * D)),
    )(params, A, A, v_row, Xnew_pad, Xnewt, s2_col, s2_row)


# ----------------------------------------------------------------------------- #
# GPRegression.forward
# ----------------------------------------------------------------------------- #
def gpr_forward(X, y, Xnew, *, noise, variance, lengthscale,
                full_cov=False, noiseless=False):
    """p(y*|Xnew) ~ N(loc, cov) for an RBF-kernel GP regression model."""
    if Xnew.ndim == 1:
        Xnew = Xnew[:, None]
    X = jnp.asarray(X, jnp.float32)
    Xnew = jnp.asarray(Xnew, jnp.float32)
    y = jnp.asarray(y, jnp.float32)

    N, D = X.shape
    M = Xnew.shape[0]

    # RBF is translation invariant: center inputs to reduce cancellation in the
    # a^2 + b^2 - 2ab squared-distance expansion.
    mu = jnp.mean(X, axis=0, keepdims=True)
    Xc = X - mu
    Xnc = Xnew - mu

    # Lane-dense padding: both the training-row axis (N -> Kff/Kfs lane dim) and the
    # test-row axis (M -> Kfs/loc/cov lane dim) are padded to multiples of 128.
    Npad = _round_up(max(N, _LANE), _LANE)
    Mp = _round_up(max(M, _LANE), _LANE)
    X_pad = jnp.zeros((Npad, D), jnp.float32).at[:N].set(Xc)
    Xnew_pad = jnp.zeros((Mp, D), jnp.float32).at[:M].set(Xnc)
    y_pad = jnp.zeros((Npad,), jnp.float32).at[:N].set(y)

    # Hoisted row norms + pre-transposed inputs (native MXU RHS, no in-kernel transpose).
    Xt = X_pad.T                                      # (D, Npad)
    Xnewt = Xnew_pad.T                                # (D, Mp)
    x2 = jnp.sum(X_pad * X_pad, axis=1).reshape(1, Npad)
    s2 = jnp.sum(Xnew_pad * Xnew_pad, axis=1).reshape(1, Mp)
    # Sentinel on padded columns of Kff -> exp(-huge) == 0, so the padded Kff is
    # exactly block-diagonal ([[Kff, 0], [0, (noise+1) I]]) and the padded rows of
    # the triangular solves are exactly zero.  (Assumes lengthscale is not
    # astronomically larger than the data scale.)
    x2 = x2.at[:, N:].set(jnp.float32(1e30))

    # Hyperparameters in SMEM -> changing them does not trigger a Mosaic recompile.
    params = jnp.asarray(
        [variance,
         -0.5 / (lengthscale * lengthscale),
         noise,
         0.0 if noiseless else noise], dtype=jnp.float32)
    n_valid = jnp.asarray([N], dtype=jnp.int32)

    vmem_cap = _vmem_capacity_bytes()

    # Fused construction of Kff (+ noise*I) and Kfs (single pallas_call).
    Kff, Kfs = build_kernel_matrices(params, n_valid, X_pad, Xt, Xnewt, x2, s2, vmem_cap)

    # Cholesky + triangular solves (sequential glue — see TODO at top).
    Lff = jnp.linalg.cholesky(Kff)
    Lffinv_y = jax.scipy.linalg.solve_triangular(Lff, y_pad, lower=True)     # (Npad,)
    Lffinv_Kfs = jax.scipy.linalg.solve_triangular(Lff, Kfs, lower=True)     # (Npad, Mp)
    v_row = Lffinv_y.reshape(1, Npad)                                        # lane-dense

    if full_cov:
        loc_p, cov_p = predict_full_pallas(params, Lffinv_Kfs, v_row,
                                           Xnew_pad, Xnewt, s2, vmem_cap)
        return loc_p[0, :M], cov_p[:M, :M]
    loc_p, cov_p = predict_diag_pallas(params, Lffinv_Kfs, v_row, vmem_cap)
    return loc_p[0, :M], cov_p[0, :M]


# ----------------------------------------------------------------------------- #
# Pure-JAX reference for verification
# ----------------------------------------------------------------------------- #
def _rbf_ref(A, B, variance, lengthscale):
    sq = jnp.sum((A[:, None, :] - B[None, :, :]) ** 2, axis=-1)
    return variance * jnp.exp(-0.5 * sq / (lengthscale ** 2))


def _gpr_ref(X, y, Xnew, noise, variance, lengthscale, full_cov=False, noiseless=False):
    N, M = X.shape[0], Xnew.shape[0]
    Kff = _rbf_ref(X, X, variance, lengthscale) + noise * jnp.eye(N)
    Kfs = _rbf_ref(X, Xnew, variance, lengthscale)
    Lff = jnp.linalg.cholesky(Kff)
    Li_y = jax.scipy.linalg.solve_triangular(Lff, y[:, None], lower=True)
    Li_Kfs = jax.scipy.linalg.solve_triangular(Lff, Kfs, lower=True)
    loc = (Li_Kfs.T @ Li_y).reshape(M)
    if full_cov:
        Kss = _rbf_ref(Xnew, Xnew, variance, lengthscale)
        if not noiseless:
            Kss = Kss + noise * jnp.eye(M)
        cov = Kss - Li_Kfs.T @ Li_Kfs
    else:
        Kssdiag = jnp.full((M,), variance)
        if not noiseless:
            Kssdiag = Kssdiag + noise
        cov = Kssdiag - jnp.sum(Li_Kfs ** 2, axis=0)
    return loc, cov


if __name__ == "__main__":
    key = jax.random.PRNGKey(0)
    kx, ky, kn = jax.random.split(key, 3)

    N, D, M = 64, 8, 32            # train points, feature dim, test points
    noise, variance, lengthscale = 0.1, 1.5, 0.7   # deterministic "guide" params

    X = jax.random.normal(kx, (N, D), jnp.float32)
    y = jnp.sin(jnp.sum(X, axis=-1)) + 0.05 * jax.random.normal(ky, (N,), jnp.float32)
    Xnew = jax.random.normal(kn, (M, D), jnp.float32)

    # Default forward: diagonal predictive covariance, noise included.
    loc, cov = gpr_forward(X, y, Xnew, noise=noise, variance=variance,
                           lengthscale=lengthscale, full_cov=False, noiseless=False)
    jax.block_until_ready((loc, cov))

    # full_cov variant.
    loc_f, cov_f = gpr_forward(X, y, Xnew, noise=noise, variance=variance,
                               lengthscale=lengthscale, full_cov=True, noiseless=False)
    jax.block_until_ready((loc_f, cov_f))

    # noiseless diagonal variant (exercises kss_noise == 0 via SMEM, no recompile).
    loc_nl, cov_nl = gpr_forward(X, y, Xnew, noise=noise, variance=variance,
                                 lengthscale=lengthscale, full_cov=False, noiseless=True)
    jax.block_until_ready((loc_nl, cov_nl))

    # Verify against pure-JAX reference.
    loc_r, cov_r = _gpr_ref(X, y, Xnew, noise, variance, lengthscale, False, False)
    loc_fr, cov_fr = _gpr_ref(X, y, Xnew, noise, variance, lengthscale, True, False)
    loc_nr, cov_nr = _gpr_ref(X, y, Xnew, noise, variance, lengthscale, False, True)
    assert jnp.allclose(loc, loc_r, atol=1e-4, rtol=1e-4)
    assert jnp.allclose(cov, cov_r, atol=1e-4, rtol=1e-4)
    assert jnp.allclose(loc_f, loc_fr, atol=1e-4, rtol=1e-4)
    assert jnp.allclose(cov_f, cov_fr, atol=1e-4, rtol=1e-4)
    assert jnp.allclose(loc_nl, loc_nr, atol=1e-4, rtol=1e-4)
    assert jnp.allclose(cov_nl, cov_nr, atol=1e-4, rtol=1e-4)

    print("KERNEL_OK")
</pallas_src>

<mosaic_0001>
module attributes {stable_mosaic.version = 11 : i64} {
  func.func @_build_kernel_mats(%arg0: i32, %arg1: memref<4xf32, #tpu.memory_space<smem>>, %arg2: memref<1xi32, #tpu.memory_space<smem>>, %arg3: memref<128x8xf32, #tpu.memory_space<vmem>>, %arg4: memref<8x128xf32, #tpu.memory_space<vmem>>, %arg5: memref<8x128xf32, #tpu.memory_space<vmem>>, %arg6: memref<1x128xf32, #tpu.memory_space<vmem>>, %arg7: memref<1x128xf32, #tpu.memory_space<vmem>>, %arg8: memref<128x128xf32, #tpu.memory_space<vmem>>, %arg9: memref<128x128xf32, #tpu.memory_space<vmem>>) attributes {dimension_semantics = [#tpu.dimension_semantics<parallel>], iteration_bounds = array<i64: 1>, scalar_prefetch = 0 : i64, scratch_operands = 0 : i64, tpu.core_type = #tpu.core_type<tc>, window_params = [{transform_indices = @transform_0, window_bounds = array<i64: 4>}, {transform_indices = @transform_1, window_bounds = array<i64: 1>}, {transform_indices = @transform_2, window_bounds = array<i64: 128, 8>}, {pipeline_mode = #tpu.pipeline_mode<synchronous>, transform_indices = @transform_3, window_bounds = array<i64: 8, 128>}, {pipeline_mode = #tpu.pipeline_mode<synchronous>, transform_indices = @transform_4, window_bounds = array<i64: 8, 128>}, {pipeline_mode = #tpu.pipeline_mode<synchronous>, transform_indices = @transform_5, window_bounds = array<i64: 1, 128>}, {pipeline_mode = #tpu.pipeline_mode<synchronous>, transform_indices = @transform_6, window_bounds = array<i64: 1, 128>}, {transform_indices = @transform_7, window_bounds = array<i64: 128, 128>}, {transform_indices = @transform_8, window_bounds = array<i64: 128, 128>}]} {
    %c0 = arith.constant 0 : index
    %0 = memref.load %arg1[%c0] : memref<4xf32, #tpu.memory_space<smem>>
    %c1 = arith.constant 1 : index
    %1 = memref.load %arg1[%c1] : memref<4xf32, #tpu.memory_space<smem>>
    %c2 = arith.constant 2 : index
    %2 = memref.load %arg1[%c2] : memref<4xf32, #tpu.memory_space<smem>>
    %c0_0 = arith.constant 0 : index
    %3 = memref.load %arg2[%c0_0] : memref<1xi32, #tpu.memory_space<smem>>
    %c128_i32 = arith.constant 128 : i32
    %4 = arith.muli %arg0, %c128_i32 : i32
    %c0_1 = arith.constant 0 : index
    %c0_2 = arith.constant 0 : index
    %5 = vector.load %arg3[%c0_1, %c0_2] : memref<128x8xf32, #tpu.memory_space<vmem>>, vector<128x8xf32>
    %6 = arith.mulf %5, %5 : vector<128x8xf32>
    %cst = arith.constant dense<0.000000e+00> : vector<128xf32>
    %7 = vector.multi_reduction <add>, %6, %cst [1] : vector<128x8xf32> to vector<128xf32>
    %8 = vector.shape_cast %7 : vector<128xf32> to vector<128x1xf32>
    %c0_3 = arith.constant 0 : index
    %c0_4 = arith.constant 0 : index
    %9 = vector.load %arg6[%c0_3, %c0_4] : memref<1x128xf32, #tpu.memory_space<vmem>>, vector<1x128xf32>
    %c0_5 = arith.constant 0 : index
    %c0_6 = arith.constant 0 : index
    %10 = vector.load %arg7[%c0_5, %c0_6] : memref<1x128xf32, #tpu.memory_space<vmem>>, vector<1x128xf32>
    %11 = tpu.iota {dimensions = array<i32: 0>} : vector<128x1xi32>
    %12 = vector.broadcast %4 : i32 to vector<128x1xi32>
    %13 = arith.addi %12, %11 : vector<128x1xi32>
    %14 = vector.broadcast %3 : i32 to vector<128x1xi32>
    %15 = arith.cmpi slt, %13, %14 : vector<128x1xi32>
    %cst_7 = arith.constant 1.000000e+00 : f32
    %16 = arith.addf %2, %cst_7 : f32
    %17 = vector.broadcast %2 : f32 to vector<128x1xf32>
    %18 = vector.broadcast %16 : f32 to vector<128x1xf32>
    %19 = arith.select %15, %17, %18 : vector<128x1xi1>, vector<128x1xf32>
    %c0_8 = arith.constant 0 : index
    %c0_9 = arith.constant 0 : index
    %20 = vector.load %arg4[%c0_8, %c0_9] : memref<8x128xf32, #tpu.memory_space<vmem>>, vector<8x128xf32>
    %cst_10 = arith.constant dense<0.000000e+00> : vector<128x128xf32>
    %21 = tpu.matmul %5, %20, %cst_10 {dimension_numbers = #tpu.dot_dimension_numbers<[1], [0], [0], [1], [0, 0, 1, 1], [], []>} : vector<128x8xf32>, vector<8x128xf32>, vector<128x128xf32> -> vector<128x128xf32>
    %22 = vector.broadcast %8 : vector<128x1xf32> to vector<128x128xf32>
    %23 = vector.broadcast %9 : vector<1x128xf32> to vector<128x128xf32>
    %24 = arith.addf %22, %23 : vector<128x128xf32>
    %cst_11 = arith.constant 2.000000e+00 : f32
    %25 = vector.broadcast %cst_11 : f32 to vector<128x128xf32>
    %26 = arith.mulf %25, %21 : vector<128x128xf32>
    %27 = arith.subf %24, %26 : vector<128x128xf32>
    %cst_12 = arith.constant 0.000000e+00 : f32
    %28 = vector.broadcast %cst_12 : f32 to vector<128x128xf32>
    %29 = arith.maximumf %27, %28 : vector<128x128xf32>
    %30 = vector.broadcast %1 : f32 to vector<128x128xf32>
    %31 = arith.mulf %30, %29 : vector<128x128xf32>
    %32 = math.exp %31 : vector<128x128xf32>
    %33 = vector.broadcast %0 : f32 to vector<128x128xf32>
    %34 = arith.mulf %33, %32 : vector<128x128xf32>
    %cst_13 = arith.constant 0.000000e+00 : f32
    %35 = vector.shape_cast %15 : vector<128x1xi1> to vector<128x1xi1>
    %36 = vector.broadcast %35 : vector<128x1xi1> to vector<128x128xi1>
    %37 = vector.broadcast %cst_13 : f32 to vector<128x128xf32>
    %38 = arith.select %36, %34, %37 : vector<128x128xi1>, vector<128x128xf32>
    %39 = tpu.iota {dimensions = array<i32: 1>} : vector<128x128xi32>
    %40 = vector.broadcast %13 : vector<128x1xi32> to vector<128x128xi32>
    %41 = arith.cmpi eq, %39, %40 : vector<128x128xi32>
    %cst_14 = arith.constant 0.000000e+00 : f32
    %42 = vector.shape_cast %19 : vector<128x1xf32> to vector<128x1xf32>
    %43 = vector.broadcast %42 : vector<128x1xf32> to vector<128x128xf32>
    %44 = vector.broadcast %cst_14 : f32 to vector<128x128xf32>
    %45 = arith.select %41, %43, %44 : vector<128x128xi1>, vector<128x128xf32>
    %46 = arith.addf %38, %45 : vector<128x128xf32>
    %c0_15 = arith.constant 0 : index
    %c0_16 = arith.constant 0 : index
    %47 = vector.load %arg8[%c0_15, %c0_16] : memref<128x128xf32, #tpu.memory_space<vmem>>, vector<128x128xf32>
    tpu.vector_store %arg8[%c0_15, %c0_16], %46 {strides = array<i32>} : memref<128x128xf32, #tpu.memory_space<vmem>>, vector<128x128xf32>,
    %c0_17 = arith.constant 0 : index
    %c0_18 = arith.constant 0 : index
    %48 = vector.load %arg5[%c0_17, %c0_18] : memref<8x128xf32, #tpu.memory_space<vmem>>, vector<8x128xf32>
    %cst_19 = arith.constant dense<0.000000e+00> : vector<128x128xf32>
    %49 = tpu.matmul %5, %48, %cst_19 {dimension_numbers = #tpu.dot_dimension_numbers<[1], [0], [0], [1], [0, 0, 1, 1], [], []>} : vector<128x8xf32>, vector<8x128xf32>, vector<128x128xf32> -> vector<128x128xf32>
    %50 = vector.broadcast %8 : vector<128x1xf32> to vector<128x128xf32>
    %51 = vector.broadcast %10 : vector<1x128xf32> to vector<128x128xf32>
    %52 = arith.addf %50, %51 : vector<128x128xf32>
    %cst_20 = arith.constant 2.000000e+00 : f32
    %53 = vector.broadcast %cst_20 : f32 to vector<128x128xf32>
    %54 = arith.mulf %53, %49 : vector<128x128xf32>
    %55 = arith.subf %52, %54 : vector<128x128xf32>
    %cst_21 = arith.constant 0.000000e+00 : f32
    %56 = vector.broadcast %cst_21 : f32 to vector<128x128xf32>
    %57 = arith.maximumf %55, %56 : vector<128x128xf32>
    %58 = vector.broadcast %1 : f32 to vector<128x128xf32>
    %59 = arith.mulf %58, %57 : vector<128x128xf32>
    %60 = math.exp %59 : vector<128x128xf32>
    %61 = vector.broadcast %0 : f32 to vector<128x128xf32>
    %62 = arith.mulf %61, %60 : vector<128x128xf32>
    %cst_22 = arith.constant 0.000000e+00 : f32
    %63 = vector.shape_cast %15 : vector<128x1xi1> to vector<128x1xi1>
    %64 = vector.broadcast %63 : vector<128x1xi1> to vector<128x128xi1>
    %65 = vector.broadcast %cst_22 : f32 to vector<128x128xf32>
    %66 = arith.select %64, %62, %65 : vector<128x128xi1>, vector<128x128xf32>
    %c0_23 = arith.constant 0 : index
    %c0_24 = arith.constant 0 : index
    %67 = vector.load %arg9[%c0_23, %c0_24] : memref<128x128xf32, #tpu.memory_space<vmem>>, vector<128x128xf32>
    tpu.vector_store %arg9[%c0_23, %c0_24], %66 {strides = array<i32>} : memref<128x128xf32, #tpu.memory_space<vmem>>, vector<128x128xf32>,
    return
  }
  func.func @transform_0(%arg0: i32) -> i32 {
    %c0_i32 = arith.constant 0 : i32
    %c0_i32_0 = arith.constant 0 : i32
    return %c0_i32 : i32
  }
  func.func @transform_1(%arg0: i32) -> i32 {
    %c0_i32 = arith.constant 0 : i32
    %c0_i32_0 = arith.constant 0 : i32
    return %c0_i32 : i32
  }
  func.func @transform_2(%arg0: i32) -> (i32, i32) {
    %c0_i32 = arith.constant 0 : i32
    %c0_i32_0 = arith.constant 0 : i32
    return %arg0, %c0_i32 : i32, i32
  }
  func.func @transform_3(%arg0: i32) -> (i32, i32) {
    %c0_i32 = arith.constant 0 : i32
    %c0_i32_0 = arith.constant 0 : i32
    %c0_i32_1 = arith.constant 0 : i32
    return %c0_i32, %c0_i32_0 : i32, i32
  }
  func.func @transform_4(%arg0: i32) -> (i32, i32) {
    %c0_i32 = arith.constant 0 : i32
    %c0_i32_0 = arith.constant 0 : i32
    %c0_i32_1 = arith.constant 0 : i32
    return %c0_i32, %c0_i32_0 : i32, i32
  }
  func.func @transform_5(%arg0: i32) -> (i32, i32) {
    %c0_i32 = arith.constant 0 : i32
    %c0_i32_0 = arith.constant 0 : i32
    %c0_i32_1 = arith.constant 0 : i32
    return %c0_i32, %c0_i32_0 : i32, i32
  }
  func.func @transform_6(%arg0: i32) -> (i32, i32) {
    %c0_i32 = arith.constant 0 : i32
    %c0_i32_0 = arith.constant 0 : i32
    %c0_i32_1 = arith.constant 0 : i32
    return %c0_i32, %c0_i32_0 : i32, i32
  }
  func.func @transform_7(%arg0: i32) -> (i32, i32) {
    %c0_i32 = arith.constant 0 : i32
    %c0_i32_0 = arith.constant 0 : i32
    return %arg0, %c0_i32 : i32, i32
  }
  func.func @transform_8(%arg0: i32) -> (i32, i32) {
    %c0_i32 = arith.constant 0 : i32
    %c0_i32_0 = arith.constant 0 : i32
    return %arg0, %c0_i32 : i32, i32
  }
}

</mosaic_0001>

<bundles_post_ra>
// kernel: tpu_custom_call.1
= control target key start
LH: loop header
LB: loop body
LE: loop exit
PB: predicated region body
PF: predicated region fallthrough
CT: control target
= control target key end

     0   :  { %15 = vsyncpa [#allocation5], 0  ;;  %s2077_s0 = inlined_call_operand.vmem [shape: f32[4], index: 0, kind: input, shape index: {}]   ;;  %s2078_s1 = inlined_call_operand.<no memory space> [shape: s32[1], index: 1, kind: input, shape index: {}]   ;;  %s2079_s2 = inlined_call_operand.vmem [shape: f32[128,8], index: 2, kind: input, shape index: {}]   ;;  %s2080_s3 = inlined_call_operand.vmem [shape: f32[8,128], index: 3, kind: input, shape index: {}]   ;;  %s2081_s4 = inlined_call_operand.vmem [shape: f32[8,128], index: 4, kind: input, shape index: {}]   ;;  %s2082_s5 = inlined_call_operand.vmem [shape: f32[1,128], index: 5, kind: input, shape index: {}]   ;;  %s2083_s6 = inlined_call_operand.vmem [shape: f32[1,128], index: 6, kind: input, shape index: {}]   ;;  %s2084_s7 = inlined_call_operand.hbm [shape: f32[128,128], index: 7, kind: output, shape index: {0}]   ;;  %s2085_s8 = inlined_call_operand.hbm [shape: f32[128,128], index: 8, kind: output, shape index: {1}]  }
   0x1   :  { %16 = vsyncpa [#allocation4], 0 }
   0x2   :  { %17 = vsyncpa [#allocation8], 0  ;;  %s24_s29 = sshll.u32 %s2077_s0, 4  ;;  %s25_s29 = int_to_ptr.vmem [resolvable:$true] %s24_s29 }
   0x3   :  { %s1182_s30 = scalar_lea.vmem %s25_s29, 16  ;;  %p1187_p1 = scmp.lt.s32.totalorder %s25_s29, %s25_s29 }
   0x4   :  { %p1183_p0 = scmp.ne.s32.totalorder %s25_s29, %s1182_s30  ;;  %p1188_p2 = scmp.lt.s32.totalorder %s1182_s30, %s1182_s30 }
   0x6   :  { %p1189_p3 = por %p1188_p2, %p1187_p1 }
   0x8   :  { %p1190_p4 = pnand %p1189_p3, %p1183_p0 }
   0xa   :  { %1193 = shalt.err (!%p1190_p4)
}
   0xb   :  { %s1244_s9 = smov [#allocation3]  }
   0xc   :  { %27 = dma.vmem_to_smem %s25_s29, 16, %s1244_s9, [#allocation5]  }
   0xd   :  { %1238 = dma.done.wait [#allocation5], 16  }
   0xe   :  { %1239 = vsyncadd [#allocation5], 4294967280 }
   0xf   :  { %43 = sfence }
  0x10   :  { %v202_v0 = vld [vmem:[%s2080_s3] sm:$0xff]  ;;  %vm81_vm0 = vcmask 64512   ;;  %v50_v3 = vld [vmem:[%s2079_s2 + $0x8] sm:$0xff]  ;;  %v51_v4 = vld [vmem:[%s2079_s2 + $0x10] sm:$0xff]  ;;  %v132_v54 = vlaneseq  ;;  %s44_s19 = sld [smem:[#allocation3]]  ;;  %v1423_v61 = vstv %s2078_s1  ;;  %s1246_s26 = smov [#allocation7]  }
  0x11   :  { %v646_v1 = vld [vmem:[%s2081_s4] sm:$0xff]  ;;  %1061 = vmatprep.subr.mxu0 %v202_v0  ;;  %v52_v6 = vld [vmem:[%s2079_s2 + $0x18] sm:$0xff]  ;;  %v67_v7 = vmul.f32 %v51_v4, %v51_v4  ;;  %v66_v9 = vmul.f32 %v50_v3, %v50_v3  ;;  %v54_v13 = vld [vmem:[%s2079_s2 + $0x28] sm:$0xff]  ;;  %s991_s4 = sld [smem:[#allocation3 + $0x1]]  ;;  %s975_s27 = sshll.u32 %s1246_s26, 4  ;;  %s2046_s27 = int_to_ptr.vmem [resolvable:$true] %s975_s27 }
  0x12   :  { %v49_v2 = vld [vmem:[%s2079_s2] sm:$0xff]  ;;  %1087 = vmatprep.subr.mxu1 %v646_v1  ;;  %1062 = vmatpush3.msra.mxu0 %v202_v0  ;;  %v68_v10 = vmul.f32 %v52_v6, %v52_v6  ;;  %v70_v16 = vmul.f32 %v54_v13, %v54_v13  ;;  %v55_v18 = vld [vmem:[%s2079_s2 + $0x30] sm:$0xff]  ;;  %v56_v19 = vld [vmem:[%s2079_s2 + $0x38] sm:$0xff]  ;;  %v1411_v57 = vshrl.u32 %v132_v54, 7  ;;  %v1428_v63 = vand.u32 127, %v132_v54 }
  0x13   :  { %v65_v5 = vmul.f32 %v49_v2, %v49_v2  ;;  %1063 = vmatprep.mubr.msk.f32.mxu0 %vm81_vm0, %v49_v2  ;;  %1088 = vmatpush3.msra.mxu1 %v646_v1  ;;  %v88_v11 = vsel %vm81_vm0, %v67_v7, 0.0  ;;  %v53_v12 = vld [vmem:[%s2079_s2 + $0x20] sm:$0xff]  ;;  %v85_v14 = vsel %vm81_vm0, %v66_v9, 0.0  ;;  %v72_v22 = vmul.f32 %v56_v19, %v56_v19  ;;  %v58_v25 = vld [vmem:[%s2079_s2 + $0x48] sm:$0xff]  ;;  %v59_v30 = vld [vmem:[%s2079_s2 + $0x50] sm:$0xff] }
  0x14   :  { %1089 = vmatprep.mubr.msk.f32.mxu1 %vm81_vm0, %v49_v2  ;;  %1064 = vmatmul.mubr.msk.f32.vlgmr.msra.gmra.mrb[0].mxu0 %vm81_vm0, %v50_v3  ;;  %v91_v15 = vsel %vm81_vm0, %v68_v10, 0.0  ;;  %v69_v17 = vmul.f32 %v53_v12, %v53_v12  ;;  %v97_v20 = vsel %vm81_vm0, %v70_v16, 0.0  ;;  %v71_v23 = vmul.f32 %v55_v18, %v55_v18  ;;  %v57_v24 = vld [vmem:[%s2079_s2 + $0x40] sm:$0xff]  ;;  %v60_v31 = vld [vmem:[%s2079_s2 + $0x58] sm:$0xff]  ;;  %v62_v37 = vld [vmem:[%s2079_s2 + $0x68] sm:$0xff]  ;;  %2109 = vst [vmem:[#allocation12_spill] sm:$0xff] %v1428_v63 }
  0x15   :  { %v82_v8 = vsel %vm81_vm0, %v65_v5, 0.0  ;;  %1090 = vmatmul.mubr.msk.f32.vlgmr.msra.gmra.mrb[0].mxu1 %vm81_vm0, %v50_v3  ;;  %1066 = vmatprep.mubr.msk.f32.mxu0 %vm81_vm0, %v51_v4  ;;  %v103_v26 = vsel %vm81_vm0, %v72_v22, 0.0  ;;  %v74_v28 = vmul.f32 %v58_v25, %v58_v25  ;;  %v73_v29 = vmul.f32 %v57_v24, %v57_v24  ;;  %v61_v36 = vld [vmem:[%s2079_s2 + $0x60] sm:$0xff]  ;;  %v63_v42 = vld [vmem:[%s2079_s2 + $0x70] sm:$0xff]  ;;  %v64_v43 = vld [vmem:[%s2079_s2 + $0x78] sm:$0xff]  ;;  %s992_s2 = sld [smem:[#allocation3 + $0x2]] }
  0x16   :  { %1092 = vmatprep.mubr.msk.f32.mxu1 %vm81_vm0, %v51_v4  ;;  %83 = vadd.xlane.f32.xlu0 %v82_v8  ;;  %v94_v21 = vsel %vm81_vm0, %v69_v17, 0.0  ;;  %v100_v27 = vsel %vm81_vm0, %v71_v23, 0.0  ;;  %v76_v34 = vmul.f32 %v60_v31, %v60_v31  ;;  %v75_v35 = vmul.f32 %v59_v30, %v59_v30 }
  0x17   :  { %89 = vadd.xlane.f32.xlu1 %v88_v11  ;;  %v109_v32 = vsel %vm81_vm0, %v74_v28, 0.0  ;;  %v106_v33 = vsel %vm81_vm0, %v73_v29, 0.0  ;;  %v78_v40 = vmul.f32 %v62_v37, %v62_v37  ;;  %v77_v41 = vmul.f32 %v61_v36, %v61_v36 }
  0x18   :  { %1067 = vmatmul.mubr.msk.f32.gmra.mrb[2].mxu0 %vm81_vm0, %v52_v6  ;;  %v115_v38 = vsel %vm81_vm0, %v76_v34, 0.0  ;;  %v112_v39 = vsel %vm81_vm0, %v75_v35, 0.0  ;;  %v80_v46 = vmul.f32 %v64_v43, %v64_v43  ;;  %v79_v47 = vmul.f32 %v63_v42, %v63_v42 }
  0x19   :  { %1093 = vmatmul.mubr.msk.f32.gmra.mrb[2].mxu1 %vm81_vm0, %v52_v6  ;;  %1069 = vmatprep.mubr.msk.f32.mxu0 %vm81_vm0, %v53_v12  ;;  %v121_v44 = vsel %vm81_vm0, %v78_v40, 0.0  ;;  %v118_v45 = vsel %vm81_vm0, %v77_v41, 0.0  ;;  %v1414_v58 = vadd.s32 8, %v1411_v57  ;;  %v1426_v62 = vadd.s32 24, %v1411_v57 }
  0x1a   :  { %1095 = vmatprep.mubr.msk.f32.mxu1 %vm81_vm0, %v53_v12  ;;  %86 = vadd.xlane.f32.xlu0 %v85_v14  ;;  %v127_v48 = vsel %vm81_vm0, %v80_v46, 0.0  ;;  %v124_v49 = vsel %vm81_vm0, %v79_v47, 0.0  ;;  %v1431_v0 = vadd.s32 16, %v1411_v57  ;;  %v1440_v3 = vadd.s32 40, %v1411_v57 }
  0x1b   :  { %92 = vadd.xlane.f32.xlu1 %v91_v15  ;;  %s183_s20 = sadd.f32 1.0, %s992_s2  ;;  %vm168_vm1 = vcmp.lt.s32.totalorder %v1414_v58, %v1423_v61  ;;  %v1435_v1 = vstv %s992_s2  ;;  %v1442_v4 = vstv %s991_s4  ;;  %v1445_v5 = vadd.s32 32, %v1411_v57 }
  0x1c   :  { %1070 = vmatmul.mubr.msk.f32.gmra.mrb[4].mxu0 %vm81_vm0, %v54_v13  ;;  %2110 = vst [vmem:[#allocation13_spill] sm:$0xff] %v1435_v1  ;;  %vm167_vm2 = vcmp.lt.s32.totalorder %v1411_v57, %v1423_v61  ;;  %vm2090_vm3 = vcmp.lt.s32.totalorder %v1426_v62, %v1423_v61  ;;  %v1452_v6 = vadd.s32 56, %v1411_v57  ;;  %v1455_v7 = vadd.s32 48, %v1411_v57 }
  0x1d   :  { %1096 = vmatmul.mubr.msk.f32.gmra.mrb[4].mxu1 %vm81_vm0, %v54_v13  ;;  %1072 = vmatprep.mubr.msk.f32.mxu0 %vm81_vm0, %v55_v18  ;;  %v1437_v2 = vstv %s183_s20  ;;  %vm583_vm4 = vcmp.eq.s32.totalorder %v1428_v63, %v1414_v58  ;;  %vm2087_vm5 = vcmp.lt.s32.totalorder %v1431_v0, %v1423_v61  ;;  %v1471_v11 = vadd.s32 72, %v1411_v57 }
  0x1e   :  { %1098 = vmatprep.mubr.msk.f32.mxu1 %vm81_vm0, %v55_v18  ;;  %95 = vadd.xlane.f32.xlu0 %v94_v21  ;;  %2111 = vst [vmem:[#allocation14_spill] sm:$0xff] %v1437_v2  ;;  %v187_v10 = vsel %vm168_vm1, %v1435_v1, %v1437_v2  ;;  %v1473_v12 = vstv %s44_s19  ;;  %vm2086_vm6 = vcmp.lt.s32.totalorder %v1440_v3, %v1423_v61  ;;  %v1478_v13 = vadd.s32 64, %v1411_v57 }
  0x1f   :  { %98 = vadd.xlane.f32.xlu1 %v97_v20  ;;  %2112 = vst [vmem:[#allocation15_spill] sm:$0xff] %v1471_v11  ;;  %v1481_v14 = vadd.s32 88, %v1411_v57  ;;  %v186_v15 = vsel %vm167_vm2, %v1435_v1, %v1437_v2  ;;  %vm582_vm7 = vcmp.eq.s32.totalorder %v1428_v63, %v1411_v57  ;;  %v189_v16 = vsel %vm2090_vm3, %v1435_v1, %v1437_v2 }
  0x20   :  { %1073 = vmatmul.mubr.msk.f32.gmra.mrb[6].mxu0 %vm81_vm0, %v56_v19  ;;  %2113 = vst [vmem:[#allocation16_spill] sm:$0xff] %v1478_v13  ;;  %vm2088_vm8 = vcmp.lt.s32.totalorder %v1445_v5, %v1423_v61  ;;  %vm585_vm9 = vcmp.eq.s32.totalorder %v1428_v63, %v1426_v62  ;;  %v188_v17 = vsel %vm2087_vm5, %v1435_v1, %v1437_v2  ;;  %v1574_v29 = vadd.s32 104, %v1411_v57 }
  0x21   :  { %1099 = vmatmul.mubr.msk.f32.gmra.mrb[6].mxu1 %vm81_vm0, %v56_v19  ;;  %1075 = vmatprep.mubr.msk.f32.mxu0 %vm81_vm0, %v57_v24  ;;  %2114 = vst [vmem:[#allocation17_spill] sm:$0xff] %v1481_v14  ;;  %vm2089_vm10 = vcmp.lt.s32.totalorder %v1452_v6, %v1423_v61  ;;  %vm173_vm11 = vcmp.lt.s32.totalorder %v1455_v7, %v1423_v61 }
  0x22   :  { %1101 = vmatprep.mubr.msk.f32.mxu1 %vm81_vm0, %v57_v24  ;;  %101 = vadd.xlane.f32.xlu0 %v100_v27  ;;  %vm584_vm12 = vcmp.eq.s32.totalorder %v1428_v63, %v1431_v0  ;;  %v191_v18 = vsel %vm2086_vm6, %v1435_v1, %v1437_v2  ;;  %vm587_vm13 = vcmp.eq.s32.totalorder %v1428_v63, %v1440_v3 }
  0x23   :  { %104 = vadd.xlane.f32.xlu1 %v103_v26  ;;  %vm2091_vm14 = vcmp.lt.s32.totalorder %v1471_v11, %v1423_v61  ;;  %vm586_vm15 = vcmp.eq.s32.totalorder %v1428_v63, %v1445_v5  ;;  %v190_v19 = vsel %vm2088_vm8, %v1435_v1, %v1437_v2  ;;  %vm178_vm6 = vcmp.lt.s32.totalorder %v1481_v14, %v1423_v61  ;;  %v1559_v26 = vld [vmem:[%s2082_s5] ss:$0 sm:$0xff] }
  0x24   :  { %1076 = vmatmul.mubr.msk.f32.gmra.mrb[8].mxu0 %vm81_vm0, %v58_v25  ;;  %v193_v22 = vsel %vm2089_vm10, %v1435_v1, %v1437_v2  ;;  %vm589_vm5 = vcmp.eq.s32.totalorder %v1428_v63, %v1452_v6  ;;  %vm588_vm8 = vcmp.eq.s32.totalorder %v1428_v63, %v1455_v7  ;;  %v192_v23 = vsel %vm173_vm11, %v1435_v1, %v1437_v2 }
  0x25   :  { %1102 = vmatmul.mubr.msk.f32.gmra.mrb[8].mxu1 %vm81_vm0, %v58_v25  ;;  %1078 = vmatprep.mubr.msk.f32.mxu0 %vm81_vm0, %v59_v30  ;;  %v195_v24 = vsel %vm2091_vm14, %v1435_v1, %v1437_v2  ;;  %vm591_vm10 = vcmp.eq.s32.totalorder %v1428_v63, %v1471_v11  ;;  %vm590_vm3 = vcmp.eq.s32.totalorder %v1428_v63, %v1478_v13  ;;  %v1554_v25 = vadd.s32 80, %v1411_v57 }
  0x26   :  { %1104 = vmatprep.mubr.msk.f32.mxu1 %vm81_vm0, %v59_v30  ;;  %107 = vadd.xlane.f32.xlu0 %v106_v33  ;;  %v197_v28 = vsel %vm178_vm6, %v1435_v1, %v1437_v2  ;;  %vm593_vm14 = vcmp.eq.s32.totalorder %v1428_v63, %v1481_v14  ;;  %2116 = vst [vmem:[#allocation19_spill] sm:$0xff] %v1574_v29  ;;  %v1579_v30 = vld [vmem:[%s2083_s6] ss:$0 sm:$0xff]  ;;  %v1594_v33 = vsel %vm585_vm9, %v189_v16, 0.0  ;;  %v1599_v34 = vsel %vm584_vm12, %v188_v17, 0.0  ;;  %s1245_s6 = smov [#allocation6]  }
  0x27   :  { %110 = vadd.xlane.f32.xlu1 %v109_v32  ;;  %2115 = vst [vmem:[#allocation18_spill] sm:$0xff] %v1554_v25  ;;  %v1589_v32 = vsel %vm582_vm7, %v186_v15, 0.0  ;;  %v1604_v35 = vsel %vm587_vm13, %v191_v18, 0.0  ;;  %v1631_v41 = vsel %vm593_vm14, %v197_v28, 0.0  ;;  %vm2137_vm13 = vcmp.lt.s32.totalorder %v1452_v6, %v1423_v61  ;;  %s963_s25 = sshll.u32 %s1245_s6, 4  ;;  %s964_s25 = int_to_ptr.vmem [resolvable:$true] %s963_s25 }
  0x28   :  { %1079 = vmatmul.mubr.msk.f32.gmra.mrb[10].mxu0 %vm81_vm0, %v60_v31  ;;  %2119 = vst [vmem:[#allocation22_spill] sm:$0xff] %v1631_v41  ;;  %vm2138_vm14 = vmmov %vm2137_vm13  ;;  %s1194_s28 = scalar_lea.vmem %s964_s25, 2048  ;;  %p1199_p6 = scmp.lt.s32.totalorder %s964_s25, %s964_s25 }
  0x29   :  { %1105 = vmatmul.mubr.msk.f32.gmra.mrb[10].mxu1 %vm81_vm0, %v60_v31  ;;  %1081 = vmatprep.mubr.msk.f32.mxu0 %vm81_vm0, %v61_v36  ;;  %v1584_v31 = vsel %vm583_vm4, %v187_v10, 0.0  ;;  %vm177_vm4 = vcmp.lt.s32.totalorder %v1554_v25, %v1423_v61  ;;  %p1195_p5 = scmp.ne.s32.totalorder %s964_s25, %s1194_s28  ;;  %p1200_p7 = scmp.lt.s32.totalorder %s1194_s28, %s1194_s28 }
  0x2a   :  { %1107 = vmatprep.mubr.msk.f32.mxu1 %vm81_vm0, %v61_v36  ;;  %113 = vadd.xlane.f32.xlu0 %v112_v39  ;;  %v1609_v36 = vsel %vm586_vm15, %v190_v19, 0.0  ;;  %v1624_v39 = vsel %vm591_vm10, %v195_v24, 0.0  ;;  %vm2135_vm10 = vcmp.lt.s32.totalorder %v1445_v5, %v1423_v61 }
  0x2b   :  { %116 = vadd.xlane.f32.xlu1 %v115_v38  ;;  %v1619_v38 = vsel %vm588_vm8, %v192_v23, 0.0  ;;  %2117 = vst [vmem:[#allocation20_spill] sm:$0xff] %v1624_v39  ;;  %vm2133_vm8 = vcmp.lt.s32.totalorder %v1440_v3, %v1423_v61  ;;  %vm2136_vm12 = vmmov %vm2135_vm10  ;;  %p1201_p8 = por %p1200_p7, %p1199_p6 }
  0x2c   :  { %1082 = vmatmul.mubr.msk.f32.gmra.mrb[12].mxu0 %vm81_vm0, %v62_v37  ;;  %vm2134_vm9 = vmmov %vm2133_vm8 }
  0x2d   :  { %1108 = vmatmul.mubr.msk.f32.gmra.mrb[12].mxu1 %vm81_vm0, %v62_v37  ;;  %1084 = vmatprep.mubr.msk.f32.mxu0 %vm81_vm0, %v63_v42  ;;  %v1614_v37 = vsel %vm589_vm5, %v193_v22, 0.0  ;;  %vm2131_vm5 = vcmp.lt.s32.totalorder %v1431_v0, %v1423_v61  ;;  %p1202_p9 = pnand %p1201_p8, %p1195_p5 }
  0x2e   :  { %1110 = vmatprep.mubr.msk.f32.mxu1 %vm81_vm0, %v63_v42  ;;  %119 = vadd.xlane.f32.xlu0 %v118_v45  ;;  %vm2132_vm7 = vmmov %vm2131_vm5 }
  0x2f   :  { %122 = vadd.xlane.f32.xlu1 %v121_v44 }
  0x30   :  { %1085 = vmatmul.mubr.msk.f32.gmra.mrb[14].mxu0 %vm81_vm0, %v64_v43 }
  0x31   :  { %1111 = vmatmul.mubr.msk.f32.gmra.mrb[14].mxu1 %vm81_vm0, %v64_v43  ;;  %vm175_vm0 = vcmp.lt.s32.totalorder %v1478_v13, %v1423_v61 }
  0x32   :  { %125 = vadd.xlane.f32.xlu0 %v124_v49  ;;  %v194_v27 = vsel %vm175_vm0, %v1435_v1, %v1437_v2 }
  0x33   :  { %128 = vadd.xlane.f32.xlu1 %v127_v48  ;;  %v1629_v40 = vsel %vm590_vm3, %v194_v27, 0.0  ;;  %vm180_vm3 = vcmp.lt.s32.totalorder %v1574_v29, %v1423_v61 }
  0x34   :  { %2118 = vst [vmem:[#allocation21_spill] sm:$0xff] %v1629_v40  ;;  %v1692_v17 = vsel %vm180_vm3, %v1435_v1, %v1437_v2 }
  0x35   :  { %2122 = vst [vmem:[#allocation25_spill] sm:$0xff] %v1692_v17 }
  0xa3   :  { %v1401_v51 = vpop.xlane.xlu0 %83 }
  0xa4   :  { %v1399_v50 = vpop.xlane.xlu1 %89  ;;  %v402_v44 = vadd.f32 %v1559_v26, %v1401_v51  ;;  %v798_v45 = vadd.f32 %v1579_v30, %v1401_v51 }
  0xa5   :  { %v1641_v46 = vadd.f32 %v1559_v26, %v1399_v50  ;;  %v1647_v47 = vadd.f32 %v1579_v30, %v1399_v50  ;;  %v1670_v50 = vsel %vm177_vm4, %v1435_v1, %v1437_v2 }
  0xa6   :  { %2120 = vst [vmem:[#allocation23_spill] sm:$0xff] %v1670_v50 }
  0xa7   :  { %v1405_v53 = vpop.xlane.xlu0 %86 }
  0xa8   :  { %v1403_v52 = vpop.xlane.xlu1 %92  ;;  %v403_v48 = vadd.f32 %v1559_v26, %v1405_v53  ;;  %v799_v49 = vadd.f32 %v1579_v30, %v1405_v53  ;;  %v1673_v53 = vadd.s32 96, %v1411_v57 }
  0xa9   :  { %v1655_v51 = vadd.f32 %v1559_v26, %v1403_v52  ;;  %v1659_v54 = vadd.f32 %v1579_v30, %v1403_v52 }
  0xaa   :  { %2121 = vst [vmem:[#allocation24_spill] sm:$0xff] %v1673_v53 }
  0xab   :  { %v1409_v56 = vpop.xlane.xlu0 %95 }
  0xac   :  { %v1407_v55 = vpop.xlane.xlu1 %98  ;;  %v1681_v52 = vadd.f32 %v1559_v26, %v1409_v56  ;;  %v1685_v16 = vadd.f32 %v1579_v30, %v1409_v56 }
  0xad   :  { %v1663_v10 = vadd.f32 %v1559_v26, %v1407_v55  ;;  %v1677_v15 = vadd.f32 %v1579_v30, %v1407_v55 }
  0xaf   :  { %v1418_v60 = vpop.xlane.xlu0 %101 }
  0xb0   :  { %v1416_v59 = vpop.xlane.xlu1 %104  ;;  %v1704_v19 = vadd.f32 %v1559_v26, %v1418_v60  ;;  %v1708_v56 = vadd.f32 %v1579_v30, %v1418_v60 }
  0xb1   :  { %v1696_v18 = vadd.f32 %v1559_v26, %v1416_v59  ;;  %v1700_v55 = vadd.f32 %v1579_v30, %v1416_v59 }
  0xb3   :  { %v1459_v9 = vpop.xlane.xlu0 %107 }
  0xb4   :  { %v1457_v8 = vpop.xlane.xlu1 %110  ;;  %v1720_v59 = vadd.f32 %v1559_v26, %v1459_v9  ;;  %v1724_v24 = vadd.f32 %v1579_v30, %v1459_v9 }
  0xb5   :  { %v1712_v22 = vadd.f32 %v1559_v26, %v1457_v8  ;;  %v1716_v23 = vadd.f32 %v1579_v30, %v1457_v8 }
  0xb7   :  { %v114_v21 = vpop.xlane.xlu0 %113 }
  0xb8   :  { %v117_v20 = vpop.xlane.xlu1 %116  ;;  %v1733_v8 = vadd.f32 %v1559_v26, %v114_v21  ;;  %v1736_v50 = vadd.f32 %v1579_v30, %v114_v21 }
  0xb9   :  { %v1727_v1 = vadd.f32 %v1559_v26, %v117_v20  ;;  %v1730_v2 = vadd.f32 %v1579_v30, %v117_v20 }
  0xbb   :  { %v120_v43 = vpop.xlane.xlu0 %119 }
  0xbc   :  { %v123_v42 = vpop.xlane.xlu1 %122  ;;  %v1745_v20 = vadd.f32 %v1559_v26, %v120_v43  ;;  %v1748_v11 = vadd.f32 %v1579_v30, %v120_v43 }
  0xbd   :  { %v1739_v14 = vadd.f32 %v1559_v26, %v123_v42  ;;  %v1742_v40 = vadd.f32 %v1579_v30, %v123_v42 }
  0xbe   :  { %2125 = vst [vmem:[#allocation28_spill] sm:$0xff] %v1745_v20  ;;  %2126 = vst [vmem:[#allocation29_spill] sm:$0xff] %v1748_v11 }
  0xbf   :  { %v126_v28 = vpop.xlane.xlu0 %125  ;;  %2123 = vst [vmem:[#allocation26_spill] sm:$0xff] %v1739_v14  ;;  %2124 = vst [vmem:[#allocation27_spill] sm:$0xff] %v1742_v40 }
  0xc0   :  { %v129_v27 = vpop.xlane.xlu1 %128 }
  0xe7   :  { %v1065_v60 = vpop.f32.mrb[0].mxu0 }
  0xe8   :  { %v1091_v17 = vpop.f32.mrb[0].mxu1  ;;  %v419_v41 = vmul.f32 2.0, %v1065_v60  ;;  %v317_v9 = vpop.f32.mrb[1].mxu0  ;;  %v1754_v60 = vadd.f32 %v1579_v30, %v129_v27 }
  0xe9   :  { %v815_v53 = vmul.f32 2.0, %v1091_v17  ;;  %v713_v29 = vpop.f32.mrb[1].mxu1  ;;  %v418_v13 = vmul.f32 2.0, %v317_v9  ;;  %v1751_v17 = vadd.f32 %v1559_v26, %v129_v27  ;;  %v1760_v9 = vadd.f32 %v1579_v30, %v126_v28 }
  0xea   :  { %v814_v39 = vmul.f32 2.0, %v713_v29  ;;  %v435_v21 = vsub.f32 %v403_v48, %v419_v41  ;;  %2128 = vst [vmem:[#allocation31_spill] sm:$0xff] %v1754_v60  ;;  %v1757_v29 = vadd.f32 %v1559_v26, %v126_v28 }
  0xeb   :  { %v831_v63 = vsub.f32 %v799_v49, %v815_v53  ;;  %2127 = vst [vmem:[#allocation30_spill] sm:$0xff] %v1751_v17  ;;  %v434_v25 = vsub.f32 %v402_v44, %v418_v13  ;;  %v1068_v42 = vpop.f32.mrb[2].mxu0 }
  0xec   :  { %v830_v14 = vsub.f32 %v798_v45, %v814_v39  ;;  %v1094_v40 = vpop.f32.mrb[2].mxu1  ;;  %v451_v43 = vmax.f32 %v435_v21, 0.0  ;;  %v421_v41 = vmul.f32 2.0, %v1068_v42  ;;  %v327_v49 = vpop.f32.mrb[3].mxu0 }
  0xed   :  { %v847_v11 = vmax.f32 %v831_v63, 0.0  ;;  %v817_v48 = vmul.f32 2.0, %v1094_v40  ;;  %v723_v53 = vpop.f32.mrb[3].mxu1  ;;  %v450_v17 = vmax.f32 %v434_v25, 0.0  ;;  %v420_v27 = vmul.f32 2.0, %v327_v49 }
  0xee   :  { %v846_v20 = vmax.f32 %v830_v14, 0.0  ;;  %v816_v60 = vmul.f32 2.0, %v723_v53  ;;  %v468_v13 = vmul.f32 %v1442_v4, %v451_v43  ;;  %v437_v26 = vsub.f32 %v1655_v51, %v421_v41 }
  0xef   :  { %v863_v39 = vmul.f32 %v847_v11, %v1442_v4  ;;  %v833_v44 = vsub.f32 %v1659_v54, %v817_v48  ;;  %v467_v30 = vmul.f32 %v1442_v4, %v450_v17  ;;  %v436_v40 = vsub.f32 %v1641_v46, %v420_v27  ;;  %v1071_v25 = vpop.f32.mrb[4].mxu0 }
  0xf0   :  { %v862_v63 = vmul.f32 %v846_v20, %v1442_v4  ;;  %v832_v45 = vsub.f32 %v1647_v47, %v816_v60  ;;  %v1097_v14 = vpop.f32.mrb[4].mxu1  ;;  %v485_v28 = vmul.f32 1.442695, %v468_v13  ;;  %v453_v42 = vmax.f32 %v437_v26, 0.0  ;;  %v337_v41 = vpop.f32.mrb[5].mxu0 }
  0xf1   :  { %v880_v21 = vmul.f32 1.442695, %v863_v39  ;;  %v849_v43 = vmax.f32 %v833_v44, 0.0  ;;  %v483_v49 = vmul.f32 1.442695, %v467_v30  ;;  %v452_v53 = vmax.f32 %v436_v40, 0.0 }
  0xf2   :  { %v878_v11 = vmul.f32 1.442695, %v862_v63  ;;  %v848_v51 = vmax.f32 %v832_v45, 0.0  ;;  %1118 = vpow2.f32 %v485_v28  ;;  %v470_v54 = vmul.f32 %v1442_v4, %v453_v42  ;;  %v733_v46 = vpop.f32.mrb[5].mxu1 }
  0xf3   :  { %v865_v17 = vmul.f32 %v849_v43, %v1442_v4  ;;  %v423_v20 = vmul.f32 2.0, %v1071_v25  ;;  %1120 = vpow2.f32 %v880_v21  ;;  %v469_v47 = vmul.f32 %v1442_v4, %v452_v53  ;;  %v1074_v27 = vpop.f32.mrb[6].mxu0 }
  0xf4   :  { %v864_v60 = vmul.f32 %v848_v51, %v1442_v4  ;;  %v819_v48 = vmul.f32 2.0, %v1097_v14  ;;  %v1100_v13 = vpop.f32.mrb[6].mxu1  ;;  %1122 = vpow2.f32 %v483_v49  ;;  %v489_v39 = vmul.f32 1.442695, %v470_v54  ;;  %v347_v30 = vpop.f32.mrb[7].mxu0 }
  0xf5   :  { %v884_v26 = vmul.f32 1.442695, %v865_v17  ;;  %v439_v44 = vsub.f32 %v1663_v10, %v423_v20  ;;  %v743_v63 = vpop.f32.mrb[7].mxu1  ;;  %1124 = vpow2.f32 %v878_v11  ;;  %v487_v40 = vmul.f32 1.442695, %v469_v47 }
  0xf6   :  { %v882_v45 = vmul.f32 1.442695, %v864_v60  ;;  %v835_v25 = vsub.f32 %v1677_v15, %v819_v48  ;;  %1126 = vpow2.f32 %v489_v39  ;;  %v422_v21 = vmul.f32 2.0, %v337_v41 }
  0xf7   :  { %v455_v28 = vmax.f32 %v439_v44, 0.0  ;;  %v818_v42 = vmul.f32 2.0, %v733_v46  ;;  %1128 = vpow2.f32 %v884_v26  ;;  %v425_v43 = vmul.f32 2.0, %v1074_v27  ;;  %v1776_v49 = vpop.f32.mrb[8].mxu0 }
  0xf8   :  { %v851_v14 = vmax.f32 %v835_v25, 0.0  ;;  %v821_v53 = vmul.f32 2.0, %v1100_v13  ;;  %v1778_v51 = vpop.f32.mrb[8].mxu1  ;;  %1130 = vpow2.f32 %v487_v40  ;;  %v438_v11 = vsub.f32 %v1681_v52, %v422_v21  ;;  %v1783_v15 = vpop.f32.mrb[9].mxu0 }
  0xf9   :  { %v472_v10 = vmul.f32 %v1442_v4, %v455_v28  ;;  %v834_v54 = vsub.f32 %v1685_v16, %v818_v42  ;;  %v1785_v17 = vpop.f32.mrb[9].mxu1  ;;  %1132 = vpow2.f32 %v882_v45  ;;  %v441_v41 = vsub.f32 %v1696_v18, %v425_v43 }
  0xfa   :  { %v867_v20 = vmul.f32 %v851_v14, %v1442_v4  ;;  %v837_v46 = vsub.f32 %v1700_v55, %v821_v53  ;;  %v454_v60 = vmax.f32 %v438_v11, 0.0  ;;  %v424_v27 = vmul.f32 2.0, %v347_v30 }
  0xfb   :  { %v493_v47 = vmul.f32 1.442695, %v472_v10  ;;  %v850_v48 = vmax.f32 %v834_v54, 0.0  ;;  %v457_v39 = vmax.f32 %v441_v41, 0.0  ;;  %v1790_v26 = vmul.f32 2.0, %v743_v63  ;;  %v1792_v16 = vpop.f32.mrb[10].mxu0 }
  0xfc   :  { %v888_v13 = vmul.f32 1.442695, %v867_v20  ;;  %v853_v52 = vmax.f32 %v837_v46, 0.0  ;;  %v1119_v44 = vpop.eup %1118  ;;  %v471_v40 = vmul.f32 %v1442_v4, %v454_v60  ;;  %v440_v18 = vsub.f32 %v1704_v19, %v424_v27  ;;  %v1797_v55 = vpop.f32.mrb[10].mxu1 }
  0xfd   :  { %1134 = vpow2.f32 %v493_v47  ;;  %v866_v45 = vmul.f32 %v850_v48, %v1442_v4  ;;  %v1799_v25 = vpop.f32.mrb[11].mxu0  ;;  %v1121_v30 = vpop.eup %1120  ;;  %v517_v28 = vmul.f32 %v1119_v44, %v1473_v12  ;;  %v474_v63 = vmul.f32 %v1442_v4, %v457_v39 }
  0xfe   :  { %1136 = vpow2.f32 %v888_v13  ;;  %v869_v21 = vmul.f32 %v853_v52, %v1442_v4  ;;  %v1804_v42 = vpop.f32.mrb[11].mxu1  ;;  %v1123_v14 = vpop.eup %1122  ;;  %v911_v43 = vmul.f32 %v1121_v30, %v1473_v12  ;;  %v491_v53 = vmul.f32 1.442695, %v471_v40 }
  0xff   :  { %v886_v10 = vmul.f32 1.442695, %v866_v45  ;;  %v456_v19 = vmax.f32 %v440_v18, 0.0  ;;  %v1125_v11 = vpop.eup %1124  ;;  %v565_v54 = vsel %vm168_vm1, %v517_v28, 0.0  ;;  %v516_v20 = vmul.f32 %v1123_v14, %v1473_v12  ;;  %v1811_v47 = vpop.f32.mrb[12].mxu0 }
 0x100   :  { %v497_v41 = vmul.f32 1.442695, %v474_v63  ;;  %v892_v46 = vmul.f32 1.442695, %v869_v21  ;;  %v1127_v60 = vpop.eup %1126  ;;  %v615_v48 = vadd.f32 %v1584_v31, %v565_v54  ;;  %v927_v27 = vsel %vm168_vm1, %v911_v43, 0.0  ;;  %v1818_v39 = vpop.f32.mrb[12].mxu1 }
 0x101   :  { %v910_v13 = vmul.f32 %v1125_v11, %v1473_v12  ;;  %1138 = vpow2.f32 %v491_v53  ;;  %v1820_v52 = vpop.f32.mrb[13].mxu0  ;;  %v1129_v44 = vpop.eup %1128  ;;  %943 = vst [vmem:[#allocation7 + $0x8] sm:$0xff] %v927_v27  ;;  %v564_v40 = vsel %vm167_vm2, %v516_v20, 0.0  ;;  %v519_v45 = vmul.f32 %v1127_v60, %v1473_v12 }
 0x102   :  { %1140 = vpow2.f32 %v886_v10  ;;  %v473_v31 = vmul.f32 %v1442_v4, %v456_v19  ;;  %v1827_v58 = vpop.f32.mrb[13].mxu1  ;;  %v1131_v18 = vpop.eup %1130  ;;  %631 = vst [vmem:[#allocation6 + $0x8] sm:$0xff] %v615_v48  ;;  %v614_v30 = vadd.f32 %v1589_v32, %v564_v40  ;;  %v913_v63 = vmul.f32 %v1129_v44, %v1473_v12 }
 0x103   :  { %v926_v28 = vsel %vm167_vm2, %v910_v13, 0.0  ;;  %1142 = vpow2.f32 %v497_v41  ;;  %v1133_v21 = vpop.eup %1132  ;;  %vm2129_vm1 = vcmp.lt.s32.totalorder %v1426_v62, %v1423_v61  ;;  %v518_v43 = vmul.f32 %v1131_v18, %v1473_v12  ;;  %v1838_v10 = vpop.f32.mrb[14].mxu0 }
 0x104   :  { %942 = vst [vmem:[#allocation7] sm:$0xff] %v926_v28  ;;  %v567_v14 = vsel %vm2129_vm1, %v519_v45, 0.0  ;;  %1144 = vpow2.f32 %v892_v46  ;;  %v495_v53 = vmul.f32 1.442695, %v473_v31  ;;  %v1840_v32 = vpop.f32.mrb[14].mxu1  ;;  %630 = vst [vmem:[#allocation6] sm:$0xff] %v614_v30  ;;  %v912_v54 = vmul.f32 %v1133_v21, %v1473_v12 }
 0x105   :  { %v617_v19 = vadd.f32 %v1594_v33, %v567_v14  ;;  %vm2130_vm2 = vmmov %vm2129_vm1  ;;  %v836_v20 = vsub.f32 %v1708_v56, %v1790_v26  ;;  %v1849_v41 = vpop.f32.mrb[15].mxu0  ;;  %v1851_v46 = vpop.f32.mrb[15].mxu1  ;;  %v566_v60 = vsel %vm2131_vm5, %v518_v43, 0.0  ;;  %v427_v33 = vmul.f32 2.0, %v1776_v49 }
 0x106   :  { %v929_v11 = vsel %vm2130_vm2, %v913_v63, 0.0  ;;  %1146 = vpow2.f32 %v495_v53  ;;  %v823_v62 = vmul.f32 2.0, %v1778_v51  ;;  %v616_v27 = vadd.f32 %v1599_v34, %v566_v60 }
 0x107   :  { %945 = vst [vmem:[#allocation7 + $0x18] sm:$0xff] %v929_v11  ;;  %v1135_v48 = vpop.eup %1134  ;;  %633 = vst [vmem:[#allocation6 + $0x18] sm:$0xff] %v617_v19  ;;  %v928_v56 = vsel %vm2132_vm7, %v912_v54, 0.0  ;;  %v852_v26 = vmax.f32 %v836_v20, 0.0  ;;  %v426_v13 = vmul.f32 2.0, %v1783_v15  ;;  %v443_v45 = vsub.f32 %v1712_v22, %v427_v33 }
 0x108   :  { %v1137_v44 = vpop.eup %1136  ;;  %944 = vst [vmem:[#allocation7 + $0x10] sm:$0xff] %v928_v56  ;;  %v521_v40 = vmul.f32 %v1135_v48, %v1473_v12  ;;  %v839_v49 = vsub.f32 %v1716_v23, %v823_v62  ;;  %v822_v51 = vmul.f32 2.0, %v1785_v17  ;;  %632 = vst [vmem:[#allocation6 + $0x10] sm:$0xff] %v616_v27  ;;  %v429_v18 = vmul.f32 2.0, %v1792_v16 }
 0x109   :  { %v915_v34 = vmul.f32 %v1137_v44, %v1473_v12  ;;  %v868_v31 = vmul.f32 %v852_v26, %v1442_v4  ;;  %v442_v0 = vsub.f32 %v1720_v59, %v426_v13  ;;  %v459_v30 = vmax.f32 %v443_v45, 0.0 }
 0x10a   :  { %v569_v15 = vsel %vm2133_vm8, %v521_v40, 0.0  ;;  %v855_v28 = vmax.f32 %v839_v49, 0.0  ;;  %v838_v22 = vsub.f32 %v1724_v24, %v822_v51  ;;  %v445_v3 = vsub.f32 %v1727_v1, %v429_v18 }
 0x10b   :  { %v1139_v23 = vpop.eup %1138  ;;  %v619_v17 = vadd.f32 %v1604_v35, %v569_v15  ;;  %v931_v63 = vsel %vm2134_vm9, %v915_v34, 0.0  ;;  %v890_v21 = vmul.f32 1.442695, %v868_v31  ;;  %v458_v14 = vmax.f32 %v442_v0, 0.0 }
 0x10c   :  { %v1141_v59 = vpop.eup %1140  ;;  %947 = vst [vmem:[#allocation7 + $0x28] sm:$0xff] %v931_v63  ;;  %v520_v16 = vmul.f32 %v1139_v23, %v1473_v12  ;;  %v476_v43 = vmul.f32 %v1442_v4, %v459_v30  ;;  %v871_v53 = vmul.f32 %v855_v28, %v1442_v4  ;;  %v854_v19 = vmax.f32 %v838_v22, 0.0  ;;  %v2139_v22 = vld [vmem:[#allocation26_spill] sm:$0xff] }
 0x10d   :  { %v1143_v11 = vpop.eup %1142  ;;  %635 = vst [vmem:[#allocation6 + $0x28] sm:$0xff] %v619_v17  ;;  %v914_v24 = vmul.f32 %v1141_v59, %v1473_v12  ;;  %1148 = vpow2.f32 %v890_v21  ;;  %v475_v35 = vmul.f32 %v1442_v4, %v458_v14  ;;  %v461_v40 = vmax.f32 %v445_v3, 0.0 }
 0x10e   :  { %v1145_v54 = vpop.eup %1144  ;;  %v568_v20 = vsel %vm2135_vm10, %v520_v16, 0.0  ;;  %v523_v60 = vmul.f32 %v1143_v11, %v1473_v12  ;;  %v501_v33 = vmul.f32 1.442695, %v476_v43  ;;  %v896_v62 = vmul.f32 1.442695, %v871_v53  ;;  %v2141_v16 = vld [vmem:[#allocation28_spill] sm:$0xff] }
 0x10f   :  { %v618_v48 = vadd.f32 %v1609_v36, %v568_v20  ;;  %v930_v27 = vsel %vm2136_vm12, %v914_v24, 0.0  ;;  %v917_v56 = vmul.f32 %v1145_v54, %v1473_v12  ;;  %v499_v26 = vmul.f32 1.442695, %v475_v35  ;;  %v2143_v54 = vld [vmem:[#allocation18_spill] sm:$0xff]  ;;  %v2144_v20 = vld [vmem:[#allocation12_spill] sm:$0xff] }
 0x110   :  { %v1147_v13 = vpop.eup %1146  ;;  %946 = vst [vmem:[#allocation7 + $0x20] sm:$0xff] %v930_v27  ;;  %v571_v1 = vsel %vm2137_vm13, %v523_v60, 0.0  ;;  %1150 = vpow2.f32 %v501_v33  ;;  %v870_v44 = vmul.f32 %v854_v19, %v1442_v4  ;;  %v478_v51 = vmul.f32 %v1442_v4, %v461_v40  ;;  %v2145_v40 = vld [vmem:[#allocation15_spill] sm:$0xff] }
 0x111   :  { %634 = vst [vmem:[#allocation6 + $0x20] sm:$0xff] %v618_v48  ;;  %v621_v36 = vadd.f32 %v1614_v37, %v571_v1  ;;  %v933_v5 = vsel %vm2138_vm14, %v917_v56, 0.0  ;;  %v522_v45 = vmul.f32 %v1147_v13, %v1473_v12  ;;  %1152 = vpow2.f32 %v896_v62 }
 0x112   :  { %949 = vst [vmem:[#allocation7 + $0x38] sm:$0xff] %v933_v5  ;;  %1154 = vpow2.f32 %v499_v26  ;;  %v894_v49 = vmul.f32 1.442695, %v870_v44  ;;  %v825_v34 = vmul.f32 2.0, %v1797_v55  ;;  %v428_v37 = vmul.f32 2.0, %v1799_v25 }
 0x113   :  { %637 = vst [vmem:[#allocation6 + $0x38] sm:$0xff] %v621_v36  ;;  %v570_v31 = vsel %vm173_vm11, %v522_v45, 0.0  ;;  %v824_v6 = vmul.f32 2.0, %v1804_v42  ;;  %v431_v0 = vmul.f32 2.0, %v1811_v47  ;;  %v505_v15 = vmul.f32 1.442695, %v478_v51 }
 0x114   :  { %v620_v18 = vadd.f32 %v1619_v38, %v570_v31  ;;  %1156 = vpow2.f32 %v894_v49  ;;  %v841_v30 = vsub.f32 %v1730_v2, %v825_v34  ;;  %v444_v28 = vsub.f32 %v1733_v8, %v428_v37  ;;  %v2140_v2 = vld [vmem:[#allocation27_spill] sm:$0xff]  ;;  %v2147_v51 = vld [vmem:[#allocation20_spill] sm:$0xff] }
 0x115   :  { %v840_v55 = vsub.f32 %v1736_v50, %v824_v6  ;;  %v447_v23 = vsub.f32 %v2139_v22, %v431_v0  ;;  %v827_v17 = vmul.f32 2.0, %v1818_v39  ;;  %1158 = vpow2.f32 %v505_v15  ;;  %v2142_v39 = vld [vmem:[#allocation29_spill] sm:$0xff] }
 0x116   :  { %636 = vst [vmem:[#allocation6 + $0x30] sm:$0xff] %v620_v18  ;;  %v857_v25 = vmax.f32 %v841_v30, 0.0  ;;  %v430_v42 = vmul.f32 2.0, %v1820_v52  ;;  %v826_v47 = vmul.f32 2.0, %v1827_v58  ;;  %v460_v63 = vmax.f32 %v444_v28, 0.0  ;;  %v2150_v28 = vld [vmem:[#allocation21_spill] sm:$0xff] }
 0x117   :  { %v1149_v38 = vpop.eup %1148  ;;  %v856_v21 = vmax.f32 %v840_v55, 0.0  ;;  %v463_v14 = vmax.f32 %v447_v23, 0.0  ;;  %v843_v59 = vsub.f32 %v2140_v2, %v827_v17  ;;  %vm592_vm15 = vcmp.eq.s32.totalorder %v2144_v20, %v2143_v54  ;;  %v2153_v2 = vld [vmem:[#allocation19_spill] sm:$0xff] }
 0x118   :  { %v916_v8 = vmul.f32 %v1149_v38, %v1473_v12  ;;  %v873_v50 = vmul.f32 %v857_v25, %v1442_v4  ;;  %v446_v43 = vsub.f32 %v2141_v16, %v430_v42  ;;  %v842_v53 = vsub.f32 %v2142_v39, %v826_v47  ;;  %v2151_v47 = vld [vmem:[#allocation30_spill] sm:$0xff] }
 0x119   :  { %v477_v19 = vmul.f32 %v1442_v4, %v460_v63  ;;  %v872_v52 = vmul.f32 %v856_v21, %v1442_v4  ;;  %v480_v58 = vmul.f32 %v1442_v4, %v463_v14  ;;  %v859_v11 = vmax.f32 %v843_v59, 0.0  ;;  %v2154_v59 = vld [vmem:[#allocation24_spill] sm:$0xff] }
 0x11a   :  { %v1151_v24 = vpop.eup %1150  ;;  %v932_v35 = vsel %vm173_vm11, %v916_v8, 0.0  ;;  %v900_v3 = vmul.f32 1.442695, %v873_v50  ;;  %v462_v60 = vmax.f32 %v446_v43, 0.0  ;;  %v858_v33 = vmax.f32 %v842_v53, 0.0  ;;  %v2156_v50 = vld [vmem:[#allocation22_spill] sm:$0xff] }
 0x11b   :  { %v1153_v62 = vpop.eup %1152  ;;  %948 = vst [vmem:[#allocation7 + $0x30] sm:$0xff] %v932_v35  ;;  %v525_v48 = vmul.f32 %v1151_v24, %v1473_v12  ;;  %v503_v27 = vmul.f32 1.442695, %v477_v19  ;;  %v898_v56 = vmul.f32 1.442695, %v872_v52  ;;  %v875_v7 = vmul.f32 %v859_v11, %v1442_v4  ;;  %v2159_v11 = vld [vmem:[#allocation13_spill] sm:$0xff] }
 0x11c   :  { %v509_v26 = vmul.f32 1.442695, %v480_v58  ;;  %v1155_v13 = vpop.eup %1154  ;;  %v919_v1 = vmul.f32 %v1153_v62, %v1473_v12  ;;  %1160 = vpow2.f32 %v900_v3  ;;  %v479_v44 = vmul.f32 %v1442_v4, %v462_v60  ;;  %v2158_v58 = vld [vmem:[#allocation14_spill] sm:$0xff] }
 0x11d   :  { %vm2146_vm11 = vcmp.lt.s32.totalorder %v2145_v40, %v1423_v61  ;;  %v524_v5 = vmul.f32 %v1155_v13, %v1473_v12  ;;  %1162 = vpow2.f32 %v503_v27  ;;  %v874_v45 = vmul.f32 %v858_v33, %v1442_v4  ;;  %v2160_v33 = vld [vmem:[#allocation25_spill] sm:$0xff] }
 0x11e   :  { %v573_v36 = vsel %vm2146_vm11, %v525_v48, 0.0  ;;  %v1157_v49 = vpop.eup %1156  ;;  %vm2148_vm1 = vmmov %vm2146_vm11  ;;  %1164 = vpow2.f32 %v898_v56  ;;  %v904_v37 = vmul.f32 1.442695, %v875_v7  ;;  %v507_v15 = vmul.f32 1.442695, %v479_v44 }
 0x11f   :  { %v623_v34 = vadd.f32 %v2147_v51, %v573_v36  ;;  %v935_v31 = vsel %vm2148_vm1, %v919_v1, 0.0  ;;  %v572_v0 = vsel %vm175_vm0, %v524_v5, 0.0  ;;  %v918_v18 = vmul.f32 %v1157_v49, %v1473_v12  ;;  %v1159_v30 = vpop.eup %1158 }
 0x120   :  { %951 = vst [vmem:[#allocation7 + $0x48] sm:$0xff] %v935_v31  ;;  %1166 = vpow2.f32 %v509_v26  ;;  %v622_v55 = vadd.f32 %v2150_v28, %v572_v0  ;;  %v902_v22 = vmul.f32 1.442695, %v874_v45  ;;  %v433_v23 = vmul.f32 2.0, %v1838_v10 }
 0x121   :  { %639 = vst [vmem:[#allocation6 + $0x48] sm:$0xff] %v623_v34  ;;  %1168 = vpow2.f32 %v904_v37  ;;  %v934_v17 = vsel %vm175_vm0, %v918_v18, 0.0  ;;  %v527_v25 = vmul.f32 %v1159_v30, %v1473_v12  ;;  %v829_v42 = vmul.f32 2.0, %v1840_v32  ;;  %v2155_v32 = vld [vmem:[#allocation31_spill] sm:$0xff] }
 0x122   :  { %1170 = vpow2.f32 %v507_v15  ;;  %638 = vst [vmem:[#allocation6 + $0x40] sm:$0xff] %v622_v55  ;;  %950 = vst [vmem:[#allocation7 + $0x40] sm:$0xff] %v934_v17  ;;  %v449_v38 = vsub.f32 %v2151_v47, %v433_v23  ;;  %v432_v63 = vmul.f32 2.0, %v1849_v41  ;;  %v828_v21 = vmul.f32 2.0, %v1851_v46  ;;  %v2157_v46 = vld [vmem:[#allocation23_spill] sm:$0xff] }
 0x123   :  { %1172 = vpow2.f32 %v902_v22  ;;  %v575_v10 = vsel %vm178_vm6, %v527_v25, 0.0  ;;  %vm595_vm0 = vcmp.eq.s32.totalorder %v2144_v20, %v2153_v2  ;;  %vm179_vm2 = vcmp.lt.s32.totalorder %v2154_v59, %v1423_v61 }
 0x124   :  { %v845_v8 = vsub.f32 %v2155_v32, %v829_v42  ;;  %v625_v16 = vadd.f32 %v2156_v50, %v575_v10  ;;  %v465_v43 = vmax.f32 %v449_v38, 0.0  ;;  %v448_v39 = vsub.f32 %v1757_v29, %v432_v63 }
 0x125   :  { %v844_v41 = vsub.f32 %v1760_v9, %v828_v21  ;;  %v608_v53 = vsel %vm592_vm15, %v2157_v46, 0.0  ;;  %vm594_vm5 = vcmp.eq.s32.totalorder %v2144_v20, %v2154_v59  ;;  %v198_v24 = vsel %vm179_vm2, %v2159_v11, %v2158_v58 }
 0x126   :  { %v861_v19 = vmax.f32 %v845_v8, 0.0  ;;  %v1161_v52 = vpop.eup %1160  ;;  %641 = vst [vmem:[#allocation6 + $0x58] sm:$0xff] %v625_v16  ;;  %v482_v29 = vmul.f32 %v1442_v4, %v465_v43  ;;  %v464_v9 = vmax.f32 %v448_v39, 0.0  ;;  %v611_v62 = vsel %vm595_vm0, %v2160_v33, 0.0 }
 0x127   :  { %v860_v35 = vmax.f32 %v844_v41, 0.0  ;;  %v1163_v3 = vpop.eup %1162  ;;  %v921_v60 = vmul.f32 %v1161_v52, %v1473_v12  ;;  %v148_v48 = vadd.s32 120, %v1411_v57  ;;  %v610_v5 = vsel %vm594_vm5, %v198_v24, 0.0 }
 0x128   :  { %v877_v27 = vmul.f32 %v861_v19, %v1442_v4  ;;  %v1165_v56 = vpop.eup %1164  ;;  %v526_v26 = vmul.f32 %v1163_v3, %v1473_v12  ;;  %v513_v13 = vmul.f32 1.442695, %v482_v29  ;;  %v481_v1 = vmul.f32 %v1442_v4, %v464_v9 }
 0x129   :  { %v876_v7 = vmul.f32 %v860_v35, %v1442_v4  ;;  %v937_v40 = vsel %vm178_vm6, %v921_v60, 0.0  ;;  %v920_v36 = vmul.f32 %v1165_v56, %v1473_v12  ;;  %v147_v23 = vadd.s32 112, %v1411_v57 }
 0x12a   :  { %v1167_v44 = vpop.eup %1166  ;;  %v908_v45 = vmul.f32 1.442695, %v877_v27  ;;  %953 = vst [vmem:[#allocation7 + $0x58] sm:$0xff] %v937_v40  ;;  %v574_v51 = vsel %vm177_vm4, %v526_v26, 0.0  ;;  %1174 = vpow2.f32 %v513_v13  ;;  %v511_v34 = vmul.f32 1.442695, %v481_v1 }
 0x12b   :  { %v1169_v49 = vpop.eup %1168  ;;  %v529_v4 = vmul.f32 %v1167_v44, %v1473_v12  ;;  %v624_v37 = vadd.f32 %v608_v53, %v574_v51  ;;  %v936_v6 = vsel %vm177_vm4, %v920_v36, 0.0  ;;  %v906_v28 = vmul.f32 1.442695, %v876_v7 }
 0x12c   :  { %v1171_v31 = vpop.eup %1170  ;;  %v923_v0 = vmul.f32 %v1169_v49, %v1473_v12  ;;  %1176 = vpow2.f32 %v908_v45  ;;  %952 = vst [vmem:[#allocation7 + $0x50] sm:$0xff] %v936_v6  ;;  %vm182_vm6 = vcmp.lt.s32.totalorder %v148_v48, %v1423_v61  ;;  %vm181_vm4 = vcmp.lt.s32.totalorder %v147_v23, %v1423_v61 }
 0x12d   :  { %v1173_v18 = vpop.eup %1172  ;;  %v577_v15 = vsel %vm180_vm3, %v529_v4, 0.0  ;;  %v528_v30 = vmul.f32 %v1171_v31, %v1473_v12  ;;  %1178 = vpow2.f32 %v511_v34  ;;  %640 = vst [vmem:[#allocation6 + $0x50] sm:$0xff] %v624_v37  ;;  %v201_v57 = vsel %vm182_vm6, %v2159_v11, %v2158_v58 }
 0x12e   :  { %v627_v55 = vadd.f32 %v611_v62, %v577_v15  ;;  %v939_v54 = vsel %vm180_vm3, %v923_v0, 0.0  ;;  %v922_v22 = vmul.f32 %v1173_v18, %v1473_v12  ;;  %1180 = vpow2.f32 %v906_v28 }
 0x12f   :  { %955 = vst [vmem:[#allocation7 + $0x68] sm:$0xff] %v939_v54  ;;  %v576_v17 = vsel %vm179_vm2, %v528_v30, 0.0  ;;  %vm597_vm3 = vcmp.eq.s32.totalorder %v2144_v20, %v148_v48  ;;  %vm596_vm7 = vcmp.eq.s32.totalorder %v2144_v20, %v147_v23  ;;  %v200_v38 = vsel %vm181_vm4, %v2159_v11, %v2158_v58 }
 0x130   :  { %643 = vst [vmem:[#allocation6 + $0x68] sm:$0xff] %v627_v55  ;;  %v626_v25 = vadd.f32 %v610_v5, %v576_v17  ;;  %v938_v42 = vsel %vm179_vm2, %v922_v22, 0.0  ;;  %v613_v14 = vsel %vm597_vm3, %v201_v57, 0.0  ;;  %v612_v8 = vsel %vm596_vm7, %v200_v38, 0.0 }
 0x131   :  { %954 = vst [vmem:[#allocation7 + $0x60] sm:$0xff] %v938_v42 }
 0x132   :  { %642 = vst [vmem:[#allocation6 + $0x60] sm:$0xff] %v626_v25 }
 0x134   :  { %v1175_v47 = vpop.eup %1174 }
 0x135   :  { %v531_v21 = vmul.f32 %v1175_v47, %v1473_v12 }
 0x136   :  { %v1177_v63 = vpop.eup %1176 }
 0x137   :  { %v1179_v10 = vpop.eup %1178  ;;  %v925_v2 = vmul.f32 %v1177_v63, %v1473_v12  ;;  %v579_v59 = vsel %vm182_vm6, %v531_v21, 0.0 }
 0x138   :  { %v530_v32 = vmul.f32 %v1179_v10, %v1473_v12  ;;  %v1181_v20 = vpop.eup %1180  ;;  %v629_v50 = vadd.f32 %v613_v14, %v579_v59 }
 0x139   :  { %v941_v16 = vsel %vm182_vm6, %v925_v2, 0.0  ;;  %v924_v39 = vmul.f32 %v1181_v20, %v1473_v12 }
 0x13a   :  { %957 = vst [vmem:[#allocation7 + $0x78] sm:$0xff] %v941_v16  ;;  %v578_v43 = vsel %vm181_vm4, %v530_v32, 0.0  ;;  %645 = vst [vmem:[#allocation6 + $0x78] sm:$0xff] %v629_v50 }
 0x13b   :  { %v628_v41 = vadd.f32 %v612_v8, %v578_v43  ;;  %v940_v46 = vsel %vm181_vm4, %v924_v39, 0.0 }
 0x13c   :  { %956 = vst [vmem:[#allocation7 + $0x70] sm:$0xff] %v940_v46 }
 0x13d   :  { %644 = vst [vmem:[#allocation6 + $0x70] sm:$0xff] %v628_v41 }
 0x13e   :  { %1205 = shalt.err (!%p1202_p9)
}
 0x13f   :  { %s1206_s9 = scalar_lea.hbm %s2084_s7, 2048 }
 0x140   :  { %p1207_p10 = scmp.ne.s32.totalorder %s2084_s7, %s1206_s9  ;;  %p1210_p11 = scmp.lt.u32.totalorder %s1206_s9, %s2084_s7 }
 0x142   :  { %p1212_p12 = pnand %p1210_p11, %p1207_p10 }
 0x144   :  { %1215 = shalt.err (!%p1212_p12)
}
 0x145   :  { %s1247_s0 = smov 128   ;;  %s1248_s14 = smov 8  }
 0x146   :  { %969 = dma.vmem_to_hbm [thread:$0]  %s964_s25, 2048, %s2084_s7, [#allocation4], %s1247_s0, %s1247_s0, %s1248_s14  }
 0x147   :  { %s1216_s17 = scalar_lea.vmem %s2046_s27, 2048  ;;  %p1221_p0 = scmp.lt.s32.totalorder %s2046_s27, %s2046_s27 }
 0x148   :  { %p1217_p13 = scmp.ne.s32.totalorder %s2046_s27, %s1216_s17  ;;  %p1222_p1 = scmp.lt.s32.totalorder %s1216_s17, %s1216_s17 }
 0x14a   :  { %p1223_p2 = por %p1222_p1, %p1221_p0 }
 0x14c   :  { %p1224_p3 = pnand %p1223_p2, %p1217_p13 }
 0x14e   :  { %1227 = shalt.err (!%p1224_p3)
}
 0x14f   :  { %s1228_s2 = scalar_lea.hbm %s2085_s8, 2048 }
 0x150   :  { %p1229_p4 = scmp.ne.s32.totalorder %s2085_s8, %s1228_s2  ;;  %p1232_p5 = scmp.lt.u32.totalorder %s1228_s2, %s2085_s8 }
 0x152   :  { %p1234_p6 = pnand %p1232_p5, %p1229_p4 }
 0x154   :  { %1237 = shalt.err (!%p1234_p6)
}
 0x155   :  { %981 = dma.vmem_to_hbm [thread:$0]  %s2046_s27, 2048, %s2085_s8, [#allocation8], %s1247_s0, %s1247_s0, %s1248_s14  }
 0x156   :  { %1240 = dma.done.wait [#allocation4], 2048  }
 0x157   :  { %1241 = vsyncadd [#allocation4], 4294965248 }
 0x158   :  { %1242 = dma.done.wait [#allocation8], 2048  }
 0x159   :  { %1243 = vsyncadd [#allocation8], 4294965248 }
 0x15a   :  { %988 = vsyncpa [#allocation4], 1 }
 0x15b   :  { %989 = vsyncpa [#allocation8], 1 }
 0x15c   :  { %990 = vsyncpa [#allocation5], 1 }

</bundles_post_ra>
